<compile_context>
chip_gen: v5e
topology: v5e:2x2
jax: 0.10.0
libtpu: 0.0.40
codegen_flags: <defaults>
</compile_context>

<pallas_src>
import jax
import jax.numpy as jnp
from jax.experimental import pallas as pl
from jax.experimental.pallas import tpu as pltpu

K_IN = 784    # 28*28 flattened input features (full last dim -> legal block)
N_OUT = 32    # latent dim (full last dim -> legal block, no padding needed)


def _round_up(n, m):
    return ((n + m - 1) // m) * m


def _choose_tile_b(B, cap=1024):
    """Row-tile size: >=4 grid steps for large batches (>=2 per TC on v7x),
    >=128 rows to amortize per-step overhead (v5e/v6e), multiple of 8,
    capped at `cap` and at the (8-rounded) batch itself."""
    b8 = _round_up(B, 8)
    t = _round_up(pl.cdiv(B, 4), 8)
    t = max(t, 128)
    return min(t, cap, b8)


def encoder_kernel(x_ref, w1_ref, b1_ref, w2_ref, b2_ref, w3_ref, b3_ref, z_ref):
    # All three Linear+ReLU layers fused; intermediates live in vregs/VMEM.
    # Matmul inputs bf16 (MXU), accumulation / bias / ReLU in f32 (VPU).
    x = x_ref[...].astype(jnp.bfloat16)                                   # (TILE_B, 784)
    h1 = jnp.dot(x, w1_ref[...], preferred_element_type=jnp.float32) + b1_ref[...]
    h1 = jnp.maximum(h1, 0.0).astype(jnp.bfloat16)                        # (TILE_B, 256)
    h2 = jnp.dot(h1, w2_ref[...], preferred_element_type=jnp.float32) + b2_ref[...]
    h2 = jnp.maximum(h2, 0.0).astype(jnp.bfloat16)                        # (TILE_B, 128)
    z = jnp.dot(h2, w3_ref[...], preferred_element_type=jnp.float32) + b3_ref[...]
    z_ref[...] = jnp.maximum(z, 0.0).astype(z_ref.dtype)                  # (TILE_B, 32)


def encoder_forward(x, params, tile_b_cap=1024):
    """x: (B, 1, 28, 28) or (B, 784), f32 or bf16. Returns (B, 32) float32."""
    B = x.shape[0]
    w1, b1, w2, b2, w3, b3 = params

    x2d = x.reshape(B, -1)          # == torch x.view(B, -1); no dtype pass here
    assert x2d.shape[1] == K_IN, x2d.shape

    TILE_B = _choose_tile_b(B, tile_b_cap)
    grid = (pl.cdiv(B, TILE_B),)    # partial last block handled by Pallas

    # One-time tiny casts of the parameters (weights bf16, biases f32).
    w1b = w1.astype(jnp.bfloat16)   # (784, 256)
    b1f = b1.astype(jnp.float32)    # (1, 256)
    w2b = w2.astype(jnp.bfloat16)   # (256, 128)
    b2f = b2.astype(jnp.float32)    # (1, 128)
    w3b = w3.astype(jnp.bfloat16)   # (128, 32)
    b3f = b3.astype(jnp.float32)    # (1, 32)

    const = lambda shape: pl.BlockSpec(shape, lambda i: (0, 0))  # VMEM-resident

    z = pl.pallas_call(
        encoder_kernel,
        out_shape=jax.ShapeDtypeStruct((B, N_OUT), jnp.float32),
        grid=grid,
        in_specs=[
            pl.BlockSpec((TILE_B, K_IN), lambda i: (i, 0)),   # x: tiled over rows
            const(w1b.shape),
            const(b1f.shape),
            const(w2b.shape),
            const(b2f.shape),
            const(w3b.shape),
            const(b3f.shape),
        ],
        out_specs=pl.BlockSpec((TILE_B, N_OUT), lambda i: (i, 0)),
        compiler_params=pltpu.CompilerParams(
            dimension_semantics=("parallel",),   # shard batch tiles across TCs (v7x)
            vmem_limit_bytes=32 << 20,           # headroom for 1024-row f32 x tiles
        ),
    )(x2d, w1b, b1f, w2b, b2f, w3b, b3f)

    return z


def init_params(key):
    """Deterministic synthetic parameters matching nn.Linear shapes.

    Stored as (in, out) f32 so the kernel computes x @ W + b (== x @ W_pt.T + b).
    """
    dims = [(784, 256), (256, 128), (128, 32)]
    params = []
    for fan_in, fan_out in dims:
        kw, kb, key = jax.random.split(key, 3)
        bound = 1.0 / jnp.sqrt(fan_in)
        w = jax.random.uniform(kw, (fan_in, fan_out), jnp.float32, -bound, bound)
        b = jax.random.uniform(kb, (1, fan_out), jnp.float32, -bound, bound)
        params += [w, b]
    return tuple(params)


def encoder_ref_bf16(x, params):
    """Plain-JAX reference with matching bf16-input / f32-accum matmuls."""
    B = x.shape[0]
    h = x.reshape(B, -1).astype(jnp.bfloat16)
    w1, b1, w2, b2, w3, b3 = params
    h = jnp.maximum(jnp.dot(h, w1.astype(jnp.bfloat16),
                            preferred_element_type=jnp.float32) + b1, 0.0).astype(jnp.bfloat16)
    h = jnp.maximum(jnp.dot(h, w2.astype(jnp.bfloat16),
                            preferred_element_type=jnp.float32) + b2, 0.0).astype(jnp.bfloat16)
    return jnp.maximum(jnp.dot(h, w3.astype(jnp.bfloat16),
                               preferred_element_type=jnp.float32) + b3, 0.0)


if __name__ == "__main__":
    key = jax.random.PRNGKey(0)
    kx, kx2, kx3, kp = jax.random.split(key, 4)
    params = init_params(kp)

    # Small MNIST-like batch (flattens to 784): single-tile path, grid=(1,).
    B_small = 8
    x_small = jax.random.normal(kx, (B_small, 1, 28, 28), jnp.float32)
    z_small = jax.block_until_ready(encoder_forward(x_small, params))
    assert z_small.shape == (B_small, N_OUT), z_small.shape
    assert jnp.allclose(z_small, encoder_ref_bf16(x_small, params), atol=2e-2, rtol=2e-2), \
        "mismatch vs reference (small batch)"

    # Non-multiple batch: exercises the partial-last-block path (grid=(2,)).
    B_ragged = 200
    x_ragged = jax.random.normal(kx3, (B_ragged, 1, 28, 28), jnp.float32)
    z_ragged = jax.block_until_ready(encoder_forward(x_ragged, params))
    assert z_ragged.shape == (B_ragged, N_OUT), z_ragged.shape
    assert jnp.allclose(z_ragged, encoder_ref_bf16(x_ragged, params), atol=2e-2, rtol=2e-2), \
        "mismatch vs reference (ragged batch)"

    # Larger batch: multi-tile pipelined path (TILE_B=256, grid=(4,)).
    B_big = 1024
    x_big = jax.random.normal(kx2, (B_big, 1, 28, 28), jnp.float32)
    z_big = jax.block_until_ready(encoder_forward(x_big, params))
    assert z_big.shape == (B_big, N_OUT), z_big.shape
    assert jnp.allclose(z_big, encoder_ref_bf16(x_big, params), atol=2e-2, rtol=2e-2), \
        "mismatch vs reference (large batch)"

    print("KERNEL_OK")
</pallas_src>

<mosaic_0001>
module attributes {stable_mosaic.version = 11 : i64} {
  func.func @encoder_kernel(%arg0: i32, %arg1: memref<8x784xf32, #tpu.memory_space<vmem>>, %arg2: memref<784x256xbf16, #tpu.memory_space<vmem>>, %arg3: memref<1x256xf32, #tpu.memory_space<vmem>>, %arg4: memref<256x128xbf16, #tpu.memory_space<vmem>>, %arg5: memref<1x128xf32, #tpu.memory_space<vmem>>, %arg6: memref<128x32xbf16, #tpu.memory_space<vmem>>, %arg7: memref<1x32xf32, #tpu.memory_space<vmem>>, %arg8: memref<8x32xf32, #tpu.memory_space<vmem>>) attributes {dimension_semantics = [#tpu.dimension_semantics<parallel>], iteration_bounds = array<i64: 1>, scalar_prefetch = 0 : i64, scratch_operands = 0 : i64, tpu.core_type = #tpu.core_type<tc>, window_params = [{transform_indices = @transform_0, window_bounds = array<i64: 8, 784>}, {pipeline_mode = #tpu.pipeline_mode<synchronous>, transform_indices = @transform_1, window_bounds = array<i64: 784, 256>}, {pipeline_mode = #tpu.pipeline_mode<synchronous>, transform_indices = @transform_2, window_bounds = array<i64: 1, 256>}, {pipeline_mode = #tpu.pipeline_mode<synchronous>, transform_indices = @transform_3, window_bounds = array<i64: 256, 128>}, {pipeline_mode = #tpu.pipeline_mode<synchronous>, transform_indices = @transform_4, window_bounds = array<i64: 1, 128>}, {pipeline_mode = #tpu.pipeline_mode<synchronous>, transform_indices = @transform_5, window_bounds = array<i64: 128, 32>}, {pipeline_mode = #tpu.pipeline_mode<synchronous>, transform_indices = @transform_6, window_bounds = array<i64: 1, 32>}, {transform_indices = @transform_7, window_bounds = array<i64: 8, 32>}]} {
    %c0 = arith.constant 0 : index
    %c0_0 = arith.constant 0 : index
    %0 = vector.load %arg1[%c0, %c0_0] : memref<8x784xf32, #tpu.memory_space<vmem>>, vector<8x784xf32>
    %1 = arith.truncf %0 : vector<8x784xf32> to vector<8x784xbf16>
    %c0_1 = arith.constant 0 : index
    %c0_2 = arith.constant 0 : index
    %2 = vector.load %arg2[%c0_1, %c0_2] : memref<784x256xbf16, #tpu.memory_space<vmem>>, vector<784x256xbf16>
    %cst = arith.constant dense<0.000000e+00> : vector<8x256xf32>
    %3 = tpu.matmul %1, %2, %cst {dimension_numbers = #tpu.dot_dimension_numbers<[1], [0], [0], [1], [0, 0, 1, 1], [], []>} : vector<8x784xbf16>, vector<784x256xbf16>, vector<8x256xf32> -> vector<8x256xf32>
    %c0_3 = arith.constant 0 : index
    %c0_4 = arith.constant 0 : index
    %4 = vector.load %arg3[%c0_3, %c0_4] : memref<1x256xf32, #tpu.memory_space<vmem>>, vector<1x256xf32>
    %5 = vector.broadcast %4 : vector<1x256xf32> to vector<8x256xf32>
    %6 = arith.addf %3, %5 : vector<8x256xf32>
    %cst_5 = arith.constant 0.000000e+00 : f32
    %7 = vector.broadcast %cst_5 : f32 to vector<8x256xf32>
    %8 = arith.maximumf %6, %7 : vector<8x256xf32>
    %9 = arith.truncf %8 : vector<8x256xf32> to vector<8x256xbf16>
    %c0_6 = arith.constant 0 : index
    %c0_7 = arith.constant 0 : index
    %10 = vector.load %arg4[%c0_6, %c0_7] : memref<256x128xbf16, #tpu.memory_space<vmem>>, vector<256x128xbf16>
    %cst_8 = arith.constant dense<0.000000e+00> : vector<8x128xf32>
    %11 = tpu.matmul %9, %10, %cst_8 {dimension_numbers = #tpu.dot_dimension_numbers<[1], [0], [0], [1], [0, 0, 1, 1], [], []>} : vector<8x256xbf16>, vector<256x128xbf16>, vector<8x128xf32> -> vector<8x128xf32>
    %c0_9 = arith.constant 0 : index
    %c0_10 = arith.constant 0 : index
    %12 = vector.load %arg5[%c0_9, %c0_10] : memref<1x128xf32, #tpu.memory_space<vmem>>, vector<1x128xf32>
    %13 = vector.broadcast %12 : vector<1x128xf32> to vector<8x128xf32>
    %14 = arith.addf %11, %13 : vector<8x128xf32>
    %cst_11 = arith.constant 0.000000e+00 : f32
    %15 = vector.broadcast %cst_11 : f32 to vector<8x128xf32>
    %16 = arith.maximumf %14, %15 : vector<8x128xf32>
    %17 = arith.truncf %16 : vector<8x128xf32> to vector<8x128xbf16>
    %c0_12 = arith.constant 0 : index
    %c0_13 = arith.constant 0 : index
    %18 = vector.load %arg6[%c0_12, %c0_13] : memref<128x32xbf16, #tpu.memory_space<vmem>>, vector<128x32xbf16>
    %cst_14 = arith.constant dense<0.000000e+00> : vector<8x32xf32>
    %19 = tpu.matmul %17, %18, %cst_14 {dimension_numbers = #tpu.dot_dimension_numbers<[1], [0], [0], [1], [0, 0, 1, 1], [], []>} : vector<8x128xbf16>, vector<128x32xbf16>, vector<8x32xf32> -> vector<8x32xf32>
    %c0_15 = arith.constant 0 : index
    %c0_16 = arith.constant 0 : index
    %20 = vector.load %arg7[%c0_15, %c0_16] : memref<1x32xf32, #tpu.memory_space<vmem>>, vector<1x32xf32>
    %21 = vector.broadcast %20 : vector<1x32xf32> to vector<8x32xf32>
    %22 = arith.addf %19, %21 : vector<8x32xf32>
    %cst_17 = arith.constant 0.000000e+00 : f32
    %23 = vector.broadcast %cst_17 : f32 to vector<8x32xf32>
    %24 = arith.maximumf %22, %23 : vector<8x32xf32>
    %c0_18 = arith.constant 0 : index
    %c0_19 = arith.constant 0 : index
    %25 = vector.load %arg8[%c0_18, %c0_19] : memref<8x32xf32, #tpu.memory_space<vmem>>, vector<8x32xf32>
    tpu.vector_store %arg8[%c0_18, %c0_19], %24 {strides = array<i32>} : memref<8x32xf32, #tpu.memory_space<vmem>>, vector<8x32xf32>,
    return
  }
  func.func @transform_0(%arg0: i32) -> (i32, i32) {
    %c0_i32 = arith.constant 0 : i32
    %c0_i32_0 = arith.constant 0 : i32
    return %arg0, %c0_i32 : i32, i32
  }
  func.func @transform_1(%arg0: i32) -> (i32, i32) {
    %c0_i32 = arith.constant 0 : i32
    %c0_i32_0 = arith.constant 0 : i32
    %c0_i32_1 = arith.constant 0 : i32
    return %c0_i32, %c0_i32_0 : i32, i32
  }
  func.func @transform_2(%arg0: i32) -> (i32, i32) {
    %c0_i32 = arith.constant 0 : i32
    %c0_i32_0 = arith.constant 0 : i32
    %c0_i32_1 = arith.constant 0 : i32
    return %c0_i32, %c0_i32_0 : i32, i32
  }
  func.func @transform_3(%arg0: i32) -> (i32, i32) {
    %c0_i32 = arith.constant 0 : i32
    %c0_i32_0 = arith.constant 0 : i32
    %c0_i32_1 = arith.constant 0 : i32
    return %c0_i32, %c0_i32_0 : i32, i32
  }
  func.func @transform_4(%arg0: i32) -> (i32, i32) {
    %c0_i32 = arith.constant 0 : i32
    %c0_i32_0 = arith.constant 0 : i32
    %c0_i32_1 = arith.constant 0 : i32
    return %c0_i32, %c0_i32_0 : i32, i32
  }
  func.func @transform_5(%arg0: i32) -> (i32, i32) {
    %c0_i32 = arith.constant 0 : i32
    %c0_i32_0 = arith.constant 0 : i32
    %c0_i32_1 = arith.constant 0 : i32
    return %c0_i32, %c0_i32_0 : i32, i32
  }
  func.func @transform_6(%arg0: i32) -> (i32, i32) {
    %c0_i32 = arith.constant 0 : i32
    %c0_i32_0 = arith.constant 0 : i32
    %c0_i32_1 = arith.constant 0 : i32
    return %c0_i32, %c0_i32_0 : i32, i32
  }
  func.func @transform_7(%arg0: i32) -> (i32, i32) {
    %c0_i32 = arith.constant 0 : i32
    %c0_i32_0 = arith.constant 0 : i32
    return %arg0, %c0_i32 : i32, i32
  }
}

</mosaic_0001>

<bundles_post_ra>
// kernel: tpu_custom_call.1
= control target key start
LH: loop header
LB: loop body
LE: loop exit
PB: predicated region body
PF: predicated region fallthrough
CT: control target
= control target key end

     0   :  { %12 = vsyncpa [#allocation3], 0  ;;  %s1959_s0 = inlined_call_operand.vmem [shape: f32[8,784], index: 0, kind: input, shape index: {}]   ;;  %s1960_s1 = inlined_call_operand.hbm [shape: bf16[784,256], index: 1, kind: input, shape index: {}]   ;;  %s1961_s2 = inlined_call_operand.vmem [shape: f32[1,256], index: 2, kind: input, shape index: {}]   ;;  %s1962_s3 = inlined_call_operand.hbm [shape: bf16[256,128], index: 3, kind: input, shape index: {}]   ;;  %s1963_s4 = inlined_call_operand.vmem [shape: f32[1,128], index: 4, kind: input, shape index: {}]   ;;  %s1964_s5 = inlined_call_operand.vmem [shape: bf16[128,32], index: 5, kind: input, shape index: {}]   ;;  %s1965_s6 = inlined_call_operand.vmem [shape: f32[1,32], index: 6, kind: input, shape index: {}]   ;;  %s1966_s7 = inlined_call_operand.hbm [shape: f32[8,32], index: 7, kind: output, shape index: {}]  }
   0x1   :  { %13 = vsyncpa [#allocation6], 0 }
   0x2   :  { %14 = vsyncpa [#allocation4], 0  ;;  %s21_s26 = sshll.u32 %s1960_s1, 4  ;;  %s1819_s27 = smov [#allocation2]   ;;  %s22_s26 = int_to_ptr.hbm [resolvable:$true] %s21_s26 }
   0x3   :  { %s23_s28 = sshll.u32 %s1819_s27, 4  ;;  %s36_s8 = sshll.u32 %s1962_s3, 4  ;;  %s24_s28 = int_to_ptr.vmem [resolvable:$true] %s23_s28  ;;  %s37_s8 = int_to_ptr.hbm [resolvable:$true] %s36_s8 }
   0x4   :  { %s1820_s9 = smov 128   ;;  %s1821_s10 = smov 8  }
   0x5   :  { %29 = dma.hbm_to_vmem [thread:$0]  %s22_s26, 12544, %s24_s28, [#allocation3], %s1820_s9, %s1820_s9, %s1821_s10  }
   0x6   :  { %s1822_s11 = smov [#allocation5]   ;;  %s1823_s13 = smov 64  }
   0x7   :  { %s38_s12 = sshll.u32 %s1822_s11, 4  ;;  %s1824_s14 = smov 4   ;;  %s39_s12 = int_to_ptr.vmem [resolvable:$true] %s38_s12 }
   0x8   :  { %44 = dma.hbm_to_vmem [thread:$0]  %s37_s8, 2048, %s39_s12, [#allocation6], %s1823_s13, %s1823_s13, %s1824_s14  }
   0x9   :  { %1813 = dma.done.wait [#allocation3], 12544  }
   0xa   :  { %1814 = vsyncadd [#allocation3], 4294954752 }
   0xb   :  { %1815 = dma.done.wait [#allocation6], 2048  }
   0xc   :  { %1816 = vsyncadd [#allocation6], 4294965248  ;;  %v1178_v0 = vld [vmem:[#allocation2 + $0x70] sm:$0xf]  ;;  %v1625_v1 = vld [vmem:[#allocation2 + $0x74] sm:$0xf0] }
   0xd   :  { %v1306_v2 = vld [vmem:[#allocation2 + $0x170] sm:$0xf]  ;;  %v1179_v3 = vor.u32 %v1625_v1, %v1178_v0  ;;  %v1657_v4 = vld [vmem:[#allocation2 + $0x174] sm:$0xf0]  ;;  %v1170_v11 = vld [vmem:[#allocation2 + $0x60] sm:$0xf] }
   0xe   :  { %v1370_v5 = vld [vmem:[#allocation2 + $0x1f0] sm:$0xf]  ;;  %v1673_v6 = vld [vmem:[#allocation2 + $0x1f4] sm:$0xf0]  ;;  %v1307_v7 = vor.u32 %v1657_v4, %v1306_v2  ;;  %v1623_v13 = vld [vmem:[#allocation2 + $0x64] sm:$0xf0] }
   0xf   :  { %v1371_v8 = vor.u32 %v1673_v6, %v1370_v5  ;;  %v1242_v9 = vld [vmem:[#allocation2 + $0xf0] sm:$0xf]  ;;  %v1641_v10 = vld [vmem:[#allocation2 + $0xf4] sm:$0xf0]  ;;  %672 = vmatpush.bf16.msra.mxu0 %v1179_v3  ;;  %v1298_v14 = vld [vmem:[#allocation2 + $0x160] sm:$0xf]  ;;  %v1171_v16 = vor.u32 %v1623_v13, %v1170_v11 }
  0x10   :  { %v1243_v12 = vor.u32 %v1641_v10, %v1242_v9  ;;  %v1655_v15 = vld [vmem:[#allocation2 + $0x164] sm:$0xf0]  ;;  %698 = vmatpush.bf16.msra.mxu2 %v1307_v7  ;;  %v1362_v18 = vld [vmem:[#allocation2 + $0x1e0] sm:$0xf]  ;;  %v1162_v23 = vld [vmem:[#allocation2 + $0x50] sm:$0xf] }
  0x11   :  { %711 = vmatpush.bf16.msra.mxu3 %v1371_v8  ;;  %v1299_v17 = vor.u32 %v1655_v15, %v1298_v14  ;;  %v1671_v19 = vld [vmem:[#allocation2 + $0x1e4] sm:$0xf0]  ;;  %v1234_v20 = vld [vmem:[#allocation2 + $0xe0] sm:$0xf]  ;;  %v1621_v24 = vld [vmem:[#allocation2 + $0x54] sm:$0xf0] }
  0x12   :  { %685 = vmatpush.bf16.msra.mxu1 %v1243_v12  ;;  %v1363_v21 = vor.u32 %v1671_v19, %v1362_v18  ;;  %v1639_v22 = vld [vmem:[#allocation2 + $0xe4] sm:$0xf0]  ;;  %v1290_v26 = vld [vmem:[#allocation2 + $0x150] sm:$0xf]  ;;  %v1653_v27 = vld [vmem:[#allocation2 + $0x154] sm:$0xf0]  ;;  %v1163_v29 = vor.u32 %v1621_v24, %v1162_v23 }
  0x13   :  { %v1235_v25 = vor.u32 %v1639_v22, %v1234_v20  ;;  %v1354_v28 = vld [vmem:[#allocation2 + $0x1d0] sm:$0xf]  ;;  %673 = vmatpush.bf16.msra.mxu0 %v1171_v16  ;;  %v1669_v30 = vld [vmem:[#allocation2 + $0x1d4] sm:$0xf0]  ;;  %v1291_v33 = vor.u32 %v1653_v27, %v1290_v26  ;;  %v1154_v35 = vld [vmem:[#allocation2 + $0x40] sm:$0xf] }
  0x14   :  { %v1226_v31 = vld [vmem:[#allocation2 + $0xd0] sm:$0xf]  ;;  %v1637_v32 = vld [vmem:[#allocation2 + $0xd4] sm:$0xf0]  ;;  %699 = vmatpush.bf16.msra.mxu2 %v1299_v17  ;;  %v1355_v34 = vor.u32 %v1669_v30, %v1354_v28  ;;  %v1619_v36 = vld [vmem:[#allocation2 + $0x44] sm:$0xf0] }
  0x15   :  { %712 = vmatpush.bf16.msra.mxu3 %v1363_v21  ;;  %v1282_v37 = vld [vmem:[#allocation2 + $0x140] sm:$0xf]  ;;  %v1227_v38 = vor.u32 %v1637_v32, %v1226_v31  ;;  %v1651_v39 = vld [vmem:[#allocation2 + $0x144] sm:$0xf0]  ;;  %v1155_v44 = vor.u32 %v1619_v36, %v1154_v35  ;;  %v1146_v47 = vld [vmem:[#allocation2 + $0x30] sm:$0xf] }
  0x16   :  { %686 = vmatpush.bf16.msra.mxu1 %v1235_v25  ;;  %v1346_v40 = vld [vmem:[#allocation2 + $0x1c0] sm:$0xf]  ;;  %v1667_v41 = vld [vmem:[#allocation2 + $0x1c4] sm:$0xf0]  ;;  %v1283_v45 = vor.u32 %v1651_v39, %v1282_v37  ;;  %v1617_v48 = vld [vmem:[#allocation2 + $0x34] sm:$0xf0] }
  0x17   :  { %v1218_v42 = vld [vmem:[#allocation2 + $0xc0] sm:$0xf]  ;;  %v1635_v43 = vld [vmem:[#allocation2 + $0xc4] sm:$0xf0]  ;;  %674 = vmatpush.bf16.msra.mxu0 %v1163_v29  ;;  %v1347_v46 = vor.u32 %v1667_v41, %v1346_v40  ;;  %v1274_v49 = vld [vmem:[#allocation2 + $0x130] sm:$0xf]  ;;  %v1147_v56 = vor.u32 %v1617_v48, %v1146_v47 }
  0x18   :  { %700 = vmatpush.bf16.msra.mxu2 %v1291_v33  ;;  %v1219_v50 = vor.u32 %v1635_v43, %v1218_v42  ;;  %v1649_v51 = vld [vmem:[#allocation2 + $0x134] sm:$0xf0]  ;;  %v1338_v52 = vld [vmem:[#allocation2 + $0x1b0] sm:$0xf]  ;;  %v1138_v59 = vld [vmem:[#allocation2 + $0x20] sm:$0xf] }
  0x19   :  { %713 = vmatpush.bf16.msra.mxu3 %v1355_v34  ;;  %v1665_v53 = vld [vmem:[#allocation2 + $0x1b4] sm:$0xf0]  ;;  %v1210_v54 = vld [vmem:[#allocation2 + $0xb0] sm:$0xf]  ;;  %v1275_v57 = vor.u32 %v1649_v51, %v1274_v49  ;;  %v1615_v60 = vld [vmem:[#allocation2 + $0x24] sm:$0xf0] }
  0x1a   :  { %687 = vmatpush.bf16.msra.mxu1 %v1227_v38  ;;  %v1633_v55 = vld [vmem:[#allocation2 + $0xb4] sm:$0xf0]  ;;  %v1339_v58 = vor.u32 %v1665_v53, %v1338_v52  ;;  %v1266_v61 = vld [vmem:[#allocation2 + $0x120] sm:$0xf]  ;;  %v1647_v63 = vld [vmem:[#allocation2 + $0x124] sm:$0xf0]  ;;  %v1139_v4 = vor.u32 %v1615_v60, %v1138_v59 }
  0x1b   :  { %675 = vmatpush.bf16.msra.mxu0 %v1155_v44  ;;  %v1211_v62 = vor.u32 %v1633_v55, %v1210_v54  ;;  %v1330_v0 = vld [vmem:[#allocation2 + $0x1a0] sm:$0xf]  ;;  %v1663_v1 = vld [vmem:[#allocation2 + $0x1a4] sm:$0xf0]  ;;  %v1267_v5 = vor.u32 %v1647_v63, %v1266_v61  ;;  %v1130_v7 = vld [vmem:[#allocation2 + $0x10] sm:$0xf] }
  0x1c   :  { %701 = vmatpush.bf16.msra.mxu2 %v1283_v45  ;;  %v1202_v2 = vld [vmem:[#allocation2 + $0xa0] sm:$0xf]  ;;  %v1631_v3 = vld [vmem:[#allocation2 + $0xa4] sm:$0xf0]  ;;  %v1331_v6 = vor.u32 %v1663_v1, %v1330_v0  ;;  %v1613_v8 = vld [vmem:[#allocation2 + $0x14] sm:$0xf0] }
  0x1d   :  { %714 = vmatpush.bf16.msra.mxu3 %v1347_v46  ;;  %v1258_v9 = vld [vmem:[#allocation2 + $0x110] sm:$0xf]  ;;  %v1203_v10 = vor.u32 %v1631_v3, %v1202_v2  ;;  %v1645_v11 = vld [vmem:[#allocation2 + $0x114] sm:$0xf0]  ;;  %v1131_v16 = vor.u32 %v1613_v8, %v1130_v7  ;;  %v1122_v17 = vld [vmem:[#allocation2] sm:$0xf] }
  0x1e   :  { %688 = vmatpush.bf16.msra.mxu1 %v1219_v50  ;;  %v1322_v12 = vld [vmem:[#allocation2 + $0x190] sm:$0xf]  ;;  %v1661_v13 = vld [vmem:[#allocation2 + $0x194] sm:$0xf0]  ;;  %v1611_v18 = vld [vmem:[#allocation2 + $0x4] sm:$0xf0]  ;;  %v1259_v20 = vor.u32 %v1645_v11, %v1258_v9 }
  0x1f   :  { %676 = vmatpush.bf16.msra.mxu0 %v1147_v56  ;;  %v1194_v14 = vld [vmem:[#allocation2 + $0x90] sm:$0xf]  ;;  %v1629_v15 = vld [vmem:[#allocation2 + $0x94] sm:$0xf0]  ;;  %v1250_v19 = vld [vmem:[#allocation2 + $0x100] sm:$0xf]  ;;  %v1323_v21 = vor.u32 %v1661_v13, %v1322_v12  ;;  %v1123_v32 = vor.u32 %v1611_v18, %v1122_v17 }
  0x20   :  { %702 = vmatpush.bf16.msra.mxu2 %v1275_v57  ;;  %v1643_v22 = vld [vmem:[#allocation2 + $0x104] sm:$0xf0]  ;;  %v1314_v23 = vld [vmem:[#allocation2 + $0x180] sm:$0xf]  ;;  %v1195_v25 = vor.u32 %v1629_v15, %v1194_v14  ;;  %v1434_v26 = vld [vmem:[#allocation2 + $0x270] sm:$0xf] }
  0x21   :  { %715 = vmatpush.bf16.msra.mxu3 %v1339_v58  ;;  %v1659_v24 = vld [vmem:[#allocation2 + $0x184] sm:$0xf0]  ;;  %v1689_v27 = vld [vmem:[#allocation2 + $0x274] sm:$0xf0]  ;;  %v1624_v28 = vld [vmem:[#allocation2 + $0x74] sm:$0xf]  ;;  %v1251_v36 = vor.u32 %v1643_v22, %v1250_v19 }
  0x22   :  { %689 = vmatpush.bf16.msra.mxu1 %v1211_v62  ;;  %v1180_v29 = vld [vmem:[#allocation2 + $0x78] sm:$0xf0]  ;;  %v1186_v30 = vld [vmem:[#allocation2 + $0x80] sm:$0xf]  ;;  %v1627_v31 = vld [vmem:[#allocation2 + $0x84] sm:$0xf0]  ;;  %v1315_v37 = vor.u32 %v1659_v24, %v1314_v23  ;;  %v1435_v41 = vor.u32 %v1689_v27, %v1434_v26 }
  0x23   :  { %677 = vmatpush.bf16.msra.mxu0 %v1139_v4  ;;  %v62_v33 = vld [vmem:[%s1959_s0 + $0x10] sm:$0xff]  ;;  %v1506_v34 = vld [vmem:[#allocation2 + $0x300] sm:$0xf]  ;;  %v1707_v35 = vld [vmem:[#allocation2 + $0x304] sm:$0xf0]  ;;  %v1183_v42 = vor.u32 %v1624_v28, %v1180_v29  ;;  %v1187_v46 = vor.u32 %v1627_v31, %v1186_v30  ;;  %vm668_vm0 = vcmask 130048  }
  0x24   :  { %703 = vmatpush.bf16.msra.mxu2 %v1267_v5  ;;  %v1498_v38 = vld [vmem:[#allocation2 + $0x2f0] sm:$0xf]  ;;  %v1705_v39 = vld [vmem:[#allocation2 + $0x2f4] sm:$0xf0]  ;;  %v1640_v40 = vld [vmem:[#allocation2 + $0xf4] sm:$0xf]  ;;  %v1507_v47 = vor.u32 %v1707_v35, %v1506_v34  ;;  %v1878_v51 = vpack.c.bf16 %v62_v33, %v62_v33 }
  0x25   :  { %716 = vmatpush.bf16.msra.mxu3 %v1331_v6  ;;  %v1244_v43 = vld [vmem:[#allocation2 + $0xf8] sm:$0xf0]  ;;  %v1426_v44 = vld [vmem:[#allocation2 + $0x260] sm:$0xf]  ;;  %v1687_v48 = vld [vmem:[#allocation2 + $0x264] sm:$0xf0]  ;;  %v1499_v52 = vor.u32 %v1705_v39, %v1498_v38 }
  0x26   :  { %690 = vmatpush.bf16.msra.mxu1 %v1203_v10  ;;  %v60_v45 = vld [vmem:[%s1959_s0] sm:$0xff]  ;;  %v1172_v50 = vld [vmem:[#allocation2 + $0x68] sm:$0xf0]  ;;  %v63_v53 = vld [vmem:[%s1959_s0 + $0x18] sm:$0xff]  ;;  %v1247_v55 = vor.u32 %v1640_v40, %v1244_v43  ;;  %v1427_v59 = vor.u32 %v1687_v48, %v1426_v44  ;;  %s1825_s22 = smov [#allocation7]   ;;  %s1109_s25 = sshll.u32 %s1966_s7, 4  ;;  %s1110_s25 = int_to_ptr.hbm [resolvable:$true] %s1109_s25 }
  0x27   :  { %678 = vmatpush.bf16.msra.mxu0 %v1131_v16  ;;  %v1622_v49 = vld [vmem:[#allocation2 + $0x64] sm:$0xf]  ;;  %v61_v54 = vld [vmem:[%s1959_s0 + $0x8] sm:$0xff]  ;;  %v1886_v56 = vpack.c.bf16 %v60_v45, %v60_v45  ;;  %v1490_v57 = vld [vmem:[#allocation2 + $0x2e0] sm:$0xf]  ;;  %v1888_v0 = vpack.c.bf16 %v63_v53, %v63_v53  ;;  %s1107_s23 = sshll.u32 %s1825_s22, 4  ;;  %s1108_s23 = int_to_ptr.vmem [resolvable:$true] %s1107_s23 }
  0x28   :  { %704 = vmatpush.bf16.msra.mxu2 %v1259_v20  ;;  %v1703_v58 = vld [vmem:[#allocation2 + $0x2e4] sm:$0xf0]  ;;  %v1175_v60 = vor.u32 %v1622_v49, %v1172_v50  ;;  %v1638_v61 = vld [vmem:[#allocation2 + $0xe4] sm:$0xf]  ;;  %v1236_v62 = vld [vmem:[#allocation2 + $0xe8] sm:$0xf0]  ;;  %v1890_v1 = vpack.c.bf16 %v61_v54, %v61_v54 }
  0x29   :  { %717 = vmatpush.bf16.msra.mxu3 %v1323_v21  ;;  %v1418_v63 = vld [vmem:[#allocation2 + $0x250] sm:$0xf]  ;;  %v1685_v2 = vld [vmem:[#allocation2 + $0x254] sm:$0xf0]  ;;  %v1620_v3 = vld [vmem:[#allocation2 + $0x54] sm:$0xf]  ;;  %v1491_v5 = vor.u32 %v1703_v58, %v1490_v57  ;;  %v1239_v6 = vor.u32 %v1638_v61, %v1236_v62 }
  0x2a   :  { %691 = vmatpush.bf16.msra.mxu1 %v1195_v25  ;;  %v1164_v4 = vld [vmem:[#allocation2 + $0x58] sm:$0xf0]  ;;  %v1482_v7 = vld [vmem:[#allocation2 + $0x2d0] sm:$0xf]  ;;  %v1701_v8 = vld [vmem:[#allocation2 + $0x2d4] sm:$0xf0]  ;;  %v1419_v9 = vor.u32 %v1685_v2, %v1418_v63 }
  0x2b   :  { %679 = vmatpush.bf16.msra.mxu0 %v1123_v32  ;;  %v1167_v10 = vor.u32 %v1620_v3, %v1164_v4  ;;  %v1636_v11 = vld [vmem:[#allocation2 + $0xd4] sm:$0xf]  ;;  %v1228_v12 = vld [vmem:[#allocation2 + $0xd8] sm:$0xf0]  ;;  %v1410_v13 = vld [vmem:[#allocation2 + $0x240] sm:$0xf]  ;;  %v1483_v17 = vor.u32 %v1701_v8, %v1482_v7 }
  0x2c   :  { %705 = vmatpush.bf16.msra.mxu2 %v1251_v36  ;;  %v1683_v14 = vld [vmem:[#allocation2 + $0x244] sm:$0xf0]  ;;  %v1618_v15 = vld [vmem:[#allocation2 + $0x44] sm:$0xf]  ;;  %v1156_v16 = vld [vmem:[#allocation2 + $0x48] sm:$0xf0]  ;;  %v1231_v18 = vor.u32 %v1636_v11, %v1228_v12 }
  0x2d   :  { %718 = vmatpush.bf16.msra.mxu3 %v1315_v37  ;;  %v1474_v19 = vld [vmem:[#allocation2 + $0x2c0] sm:$0xf]  ;;  %v1699_v20 = vld [vmem:[#allocation2 + $0x2c4] sm:$0xf0]  ;;  %v1411_v21 = vor.u32 %v1683_v14, %v1410_v13  ;;  %v1159_v22 = vor.u32 %v1618_v15, %v1156_v16  ;;  %v1634_v23 = vld [vmem:[#allocation2 + $0xc4] sm:$0xf] }
  0x2e   :  { %692 = vmatpush.bf16.msra.mxu1 %v1187_v46  ;;  %680 = vmatmul.bf16.vlgmr.msra.gmra.mxu0 %v1886_v56  ;;  %v1220_v24 = vld [vmem:[#allocation2 + $0xc8] sm:$0xf0]  ;;  %v1402_v25 = vld [vmem:[#allocation2 + $0x230] sm:$0xf]  ;;  %v1681_v26 = vld [vmem:[#allocation2 + $0x234] sm:$0xf0]  ;;  %v1475_v29 = vor.u32 %v1699_v20, %v1474_v19 }
  0x2f   :  { %724 = vmatpush.bf16.msrb.mxu0 %v1435_v41  ;;  %706 = vmatmul.bf16.vlgmr.msra.gmra.mxu2 %v1878_v51  ;;  %v1616_v27 = vld [vmem:[#allocation2 + $0x34] sm:$0xf]  ;;  %v1148_v28 = vld [vmem:[#allocation2 + $0x38] sm:$0xf0]  ;;  %v1223_v30 = vor.u32 %v1634_v23, %v1220_v24  ;;  %v1466_v31 = vld [vmem:[#allocation2 + $0x2b0] sm:$0xf]  ;;  %v1403_v34 = vor.u32 %v1681_v26, %v1402_v25 }
  0x30   :  { %757 = vmatpush.bf16.msrb.mxu2 %v1507_v47  ;;  %719 = vmatmul.bf16.vlgmr.msra.gmra.mxu3 %v1888_v0  ;;  %v1697_v32 = vld [vmem:[#allocation2 + $0x2b4] sm:$0xf0]  ;;  %v66_v33 = vld [vmem:[%s1959_s0 + $0x30] sm:$0xff]  ;;  %v1151_v35 = vor.u32 %v1616_v27, %v1148_v28  ;;  %v1212_v37 = vld [vmem:[#allocation2 + $0xb8] sm:$0xf0]  ;;  %vm1100_vm1 = vcmask 261120  }
  0x31   :  { %763 = vmatpush.bf16.msrb.mxu3 %v1183_v42  ;;  %693 = vmatmul.bf16.vlgmr.msra.gmra.mxu1 %v1890_v1  ;;  %v1632_v36 = vld [vmem:[#allocation2 + $0xb4] sm:$0xf]  ;;  %v1394_v38 = vld [vmem:[#allocation2 + $0x220] sm:$0xf]  ;;  %v1679_v39 = vld [vmem:[#allocation2 + $0x224] sm:$0xf0]  ;;  %v1467_v42 = vor.u32 %v1697_v32, %v1466_v31  ;;  %v1899_v43 = vpack.c.bf16 %v66_v33, %v66_v33 }
  0x32   :  { %737 = vmatpush.bf16.msrb.mxu1 %v1499_v52  ;;  %v1614_v40 = vld [vmem:[#allocation2 + $0x24] sm:$0xf]  ;;  %v1140_v41 = vld [vmem:[#allocation2 + $0x28] sm:$0xf0]  ;;  %v1215_v44 = vor.u32 %v1632_v36, %v1212_v37  ;;  %v1458_v45 = vld [vmem:[#allocation2 + $0x2a0] sm:$0xf]  ;;  %v1395_v47 = vor.u32 %v1679_v39, %v1394_v38 }
  0x33   :  { %725 = vmatpush.bf16.msrb.mxu0 %v1427_v59  ;;  %v1695_v46 = vld [vmem:[#allocation2 + $0x2a4] sm:$0xf0]  ;;  %v1143_v48 = vor.u32 %v1614_v40, %v1140_v41  ;;  %v1630_v49 = vld [vmem:[#allocation2 + $0xa4] sm:$0xf]  ;;  %v1204_v50 = vld [vmem:[#allocation2 + $0xa8] sm:$0xf0] }
  0x34   :  { %776 = vmatpush.bf16.msra.mxu2 %v1247_v55  ;;  %v1386_v52 = vld [vmem:[#allocation2 + $0x210] sm:$0xf]  ;;  %v1677_v53 = vld [vmem:[#allocation2 + $0x214] sm:$0xf0]  ;;  %v1612_v54 = vld [vmem:[#allocation2 + $0x14] sm:$0xf]  ;;  %v1459_v57 = vor.u32 %v1695_v46, %v1458_v45  ;;  %v1207_v58 = vor.u32 %v1630_v49, %v1204_v50 }
  0x35   :  { %764 = vmatpush.bf16.msrb.mxu3 %v1175_v60  ;;  %v1132_v55 = vld [vmem:[#allocation2 + $0x18] sm:$0xf0]  ;;  %v1450_v59 = vld [vmem:[#allocation2 + $0x290] sm:$0xf]  ;;  %v1693_v60 = vld [vmem:[#allocation2 + $0x294] sm:$0xf0]  ;;  %v1387_v62 = vor.u32 %v1677_v53, %v1386_v52 }
  0x36   :  { %738 = vmatpush.bf16.msrb.mxu1 %v1491_v5  ;;  %v1628_v61 = vld [vmem:[#allocation2 + $0x94] sm:$0xf]  ;;  %v1135_v63 = vor.u32 %v1612_v54, %v1132_v55  ;;  %v1196_v2 = vld [vmem:[#allocation2 + $0x98] sm:$0xf0]  ;;  %v1378_v3 = vld [vmem:[#allocation2 + $0x200] sm:$0xf]  ;;  %v1451_v8 = vor.u32 %v1693_v60, %v1450_v59 }
  0x37   :  { %726 = vmatpush.bf16.msrb.mxu0 %v1419_v9  ;;  %v1675_v4 = vld [vmem:[#allocation2 + $0x204] sm:$0xf0]  ;;  %v1610_v5 = vld [vmem:[#allocation2 + $0x4] sm:$0xf]  ;;  %v1656_v7 = vld [vmem:[#allocation2 + $0x174] sm:$0xf]  ;;  %v1199_v12 = vor.u32 %v1628_v61, %v1196_v2 }
  0x38   :  { %777 = vmatpush.bf16.msra.mxu2 %v1239_v6  ;;  %v1124_v6 = vld [vmem:[#allocation2 + $0x8] sm:$0xf0]  ;;  %v1308_v9 = vld [vmem:[#allocation2 + $0x178] sm:$0xf0]  ;;  %v1442_v13 = vld [vmem:[#allocation2 + $0x280] sm:$0xf]  ;;  %v1379_v16 = vor.u32 %v1675_v4, %v1378_v3 }
  0x39   :  { %765 = vmatpush.bf16.msrb.mxu3 %v1167_v10  ;;  %v1688_v10 = vld [vmem:[#allocation2 + $0x274] sm:$0xf]  ;;  %v1436_v11 = vld [vmem:[#allocation2 + $0x278] sm:$0xf0]  ;;  %v1691_v14 = vld [vmem:[#allocation2 + $0x284] sm:$0xf0] }
  0x3a   :  { %739 = vmatpush.bf16.msrb.mxu1 %v1483_v17  ;;  %v64_v15 = vld [vmem:[%s1959_s0 + $0x20] sm:$0xff]  ;;  %v1127_v17 = vor.u32 %v1610_v5, %v1124_v6  ;;  %v1188_v19 = vld [vmem:[#allocation2 + $0x88] sm:$0xf0]  ;;  %v1672_v20 = vld [vmem:[#allocation2 + $0x1f4] sm:$0xf]  ;;  %v1443_v26 = vor.u32 %v1691_v14, %v1442_v13 }
  0x3b   :  { %727 = vmatpush.bf16.msrb.mxu0 %v1411_v21  ;;  %v1311_v21 = vor.u32 %v1656_v7, %v1308_v9  ;;  %v1372_v23 = vld [vmem:[#allocation2 + $0x1f8] sm:$0xf0]  ;;  %v1704_v24 = vld [vmem:[#allocation2 + $0x2f4] sm:$0xf]  ;;  %v65_v27 = vld [vmem:[%s1959_s0 + $0x28] sm:$0xff] }
  0x3c   :  { %778 = vmatpush.bf16.msra.mxu2 %v1231_v18  ;;  %v1626_v18 = vld [vmem:[#allocation2 + $0x84] sm:$0xf]  ;;  %v1500_v25 = vld [vmem:[#allocation2 + $0x2f8] sm:$0xf0]  ;;  %v1428_v33 = vld [vmem:[#allocation2 + $0x268] sm:$0xf0]  ;;  %v1911_v37 = vpack.c.bf16 %v65_v27, %v65_v27 }
  0x3d   :  { %766 = vmatpush.bf16.msrb.mxu3 %v1159_v22  ;;  %v1439_v22 = vor.u32 %v1688_v10, %v1436_v11  ;;  %v1654_v28 = vld [vmem:[#allocation2 + $0x164] sm:$0xf]  ;;  %v1191_v31 = vor.u32 %v1626_v18, %v1188_v19  ;;  %v1364_v39 = vld [vmem:[#allocation2 + $0x1e8] sm:$0xf0]  ;;  %v1292_v45 = vld [vmem:[#allocation2 + $0x158] sm:$0xf0] }
  0x3e   :  { %740 = vmatpush.bf16.msrb.mxu1 %v1475_v29  ;;  %v1300_v29 = vld [vmem:[#allocation2 + $0x168] sm:$0xf0]  ;;  %v1686_v32 = vld [vmem:[#allocation2 + $0x264] sm:$0xf]  ;;  %v1684_v46 = vld [vmem:[#allocation2 + $0x254] sm:$0xf] }
  0x3f   :  { %728 = vmatpush.bf16.msrb.mxu0 %v1403_v34  ;;  %1512 = vmatmul.msk.bf16.vlgmr.msrb.gmra.mxu2 %vm668_vm0, %v1899_v43  ;;  %v1375_v34 = vor.u32 %v1672_v20, %v1372_v23  ;;  %v1670_v36 = vld [vmem:[#allocation2 + $0x1e4] sm:$0xf]  ;;  %v1303_v38 = vor.u32 %v1654_v28, %v1300_v29  ;;  %v1492_v41 = vld [vmem:[#allocation2 + $0x2e8] sm:$0xf0]  ;;  %v1668_v50 = vld [vmem:[#allocation2 + $0x1d4] sm:$0xf] }
  0x40   :  { %779 = vmatpush.bf16.msra.mxu2 %v1223_v30  ;;  %v1909_v30 = vpack.c.bf16 %v64_v15, %v64_v15  ;;  %v1702_v40 = vld [vmem:[#allocation2 + $0x2e4] sm:$0xf]  ;;  %v1356_v53 = vld [vmem:[#allocation2 + $0x1d8] sm:$0xf0]  ;;  %v1700_v54 = vld [vmem:[#allocation2 + $0x2d4] sm:$0xf] }
  0x41   :  { %767 = vmatpush.bf16.msrb.mxu3 %v1151_v35  ;;  %v1503_v35 = vor.u32 %v1704_v24, %v1500_v25  ;;  %v1495_v49 = vor.u32 %v1702_v40, %v1492_v41  ;;  %v1484_v55 = vld [vmem:[#allocation2 + $0x2d8] sm:$0xf0]  ;;  %v1284_v59 = vld [vmem:[#allocation2 + $0x148] sm:$0xf0]  ;;  %v1682_v60 = vld [vmem:[#allocation2 + $0x244] sm:$0xf] }
  0x42   :  { %741 = vmatpush.bf16.msrb.mxu1 %v1467_v42  ;;  %v1431_v42 = vor.u32 %v1686_v32, %v1428_v33  ;;  %v1412_v61 = vld [vmem:[#allocation2 + $0x248] sm:$0xf0]  ;;  %v1666_v2 = vld [vmem:[#allocation2 + $0x1c4] sm:$0xf]  ;;  %v1680_v9 = vld [vmem:[#allocation2 + $0x234] sm:$0xf] }
  0x43   :  { %729 = vmatpush.bf16.msrb.mxu0 %v1395_v47  ;;  %v1420_v47 = vld [vmem:[#allocation2 + $0x258] sm:$0xf0]  ;;  %v1348_v4 = vld [vmem:[#allocation2 + $0x1c8] sm:$0xf0]  ;;  %v1698_v5 = vld [vmem:[#allocation2 + $0x2c4] sm:$0xf]  ;;  %v1415_v7 = vor.u32 %v1682_v60, %v1412_v61 }
  0x44   :  { %780 = vmatpush.bf16.msra.mxu2 %v1215_v44  ;;  %v1652_v44 = vld [vmem:[#allocation2 + $0x154] sm:$0xf]  ;;  %v1476_v6 = vld [vmem:[#allocation2 + $0x2c8] sm:$0xf0]  ;;  %v1404_v10 = vld [vmem:[#allocation2 + $0x238] sm:$0xf0]  ;;  %v1351_v11 = vor.u32 %v1666_v2, %v1348_v4 }
  0x45   :  { %768 = vmatpush.bf16.msrb.mxu3 %v1143_v48  ;;  %v1367_v48 = vor.u32 %v1670_v36, %v1364_v39  ;;  %v1295_v52 = vor.u32 %v1652_v44, %v1292_v45  ;;  %v1340_v14 = vld [vmem:[#allocation2 + $0x1b8] sm:$0xf0]  ;;  %v1696_v15 = vld [vmem:[#allocation2 + $0x2b4] sm:$0xf]  ;;  %v1646_v18 = vld [vmem:[#allocation2 + $0x124] sm:$0xf] }
  0x46   :  { %742 = vmatpush.bf16.msrb.mxu1 %v1459_v57  ;;  %v1423_v57 = vor.u32 %v1684_v46, %v1420_v47  ;;  %v1268_v19 = vld [vmem:[#allocation2 + $0x128] sm:$0xf0]  ;;  %v1678_v20 = vld [vmem:[#allocation2 + $0x224] sm:$0xf]  ;;  %v1260_v32 = vld [vmem:[#allocation2 + $0x118] sm:$0xf0] }
  0x47   :  { %730 = vmatpush.bf16.msrb.mxu0 %v1387_v62  ;;  %v1359_v62 = vor.u32 %v1668_v50, %v1356_v53  ;;  %v1662_v24 = vld [vmem:[#allocation2 + $0x1a4] sm:$0xf]  ;;  %v1271_v25 = vor.u32 %v1646_v18, %v1268_v19  ;;  %v1460_v28 = vld [vmem:[#allocation2 + $0x2a8] sm:$0xf0]  ;;  %v1676_v33 = vld [vmem:[#allocation2 + $0x214] sm:$0xf] }
  0x48   :  { %781 = vmatpush.bf16.msra.mxu2 %v1207_v58  ;;  %v1650_v58 = vld [vmem:[#allocation2 + $0x144] sm:$0xf]  ;;  %v1324_v40 = vld [vmem:[#allocation2 + $0x198] sm:$0xf0]  ;;  %v1692_v41 = vld [vmem:[#allocation2 + $0x294] sm:$0xf] }
  0x49   :  { %769 = vmatpush.bf16.msrb.mxu3 %v1135_v63  ;;  %v1487_v63 = vor.u32 %v1700_v54, %v1484_v55  ;;  %v1287_v3 = vor.u32 %v1650_v58, %v1284_v59  ;;  %v1694_v27 = vld [vmem:[#allocation2 + $0x2a4] sm:$0xf]  ;;  %v1252_v46 = vld [vmem:[#allocation2 + $0x108] sm:$0xf0]  ;;  %v1713_v4 = vld [vmem:[#allocation5 + $0x28] sm:$0xff] }
  0x4a   :  { %743 = vmatpush.bf16.msrb.mxu1 %v1451_v8  ;;  %v1648_v8 = vld [vmem:[#allocation2 + $0x134] sm:$0xf]  ;;  %v1463_v36 = vor.u32 %v1694_v27, %v1460_v28  ;;  %v1642_v45 = vld [vmem:[#allocation2 + $0x104] sm:$0xf]  ;;  %v1316_v54 = vld [vmem:[#allocation2 + $0x188] sm:$0xf0] }
  0x4b   :  { %731 = vmatpush.bf16.msrb.mxu0 %v1379_v16  ;;  %v1468_v16 = vld [vmem:[#allocation2 + $0x2b8] sm:$0xf0]  ;;  %v1674_v47 = vld [vmem:[#allocation2 + $0x204] sm:$0xf]  ;;  %v1444_v58 = vld [vmem:[#allocation2 + $0x288] sm:$0xf0] }
  0x4c   :  { %782 = vmatpush.bf16.msra.mxu2 %v1199_v12  ;;  %v1664_v12 = vld [vmem:[#allocation2 + $0x1b4] sm:$0xf]  ;;  %v1471_v23 = vor.u32 %v1696_v15, %v1468_v16  ;;  %v1658_v53 = vld [vmem:[#allocation2 + $0x184] sm:$0xf]  ;;  %v1508_v60 = vld [vmem:[#allocation2 + $0x308] sm:$0xf0] }
  0x4d   :  { %770 = vmatpush.bf16.msrb.mxu3 %v1127_v17  ;;  %v1407_v17 = vor.u32 %v1680_v9, %v1404_v10  ;;  %v1706_v59 = vld [vmem:[#allocation2 + $0x304] sm:$0xf]  ;;  %v1319_v61 = vor.u32 %v1658_v53, %v1316_v54  ;;  %v1715_v2 = vld [vmem:[#allocation5 + $0x38] sm:$0xff] }
  0x4e   :  { %744 = vmatpush.bf16.msrb.mxu1 %v1443_v26  ;;  %732 = vmatmul.bf16.vlgmr.msrb.gmra.mxu0 %v1909_v30  ;;  %v1332_v26 = vld [vmem:[#allocation2 + $0x1a8] sm:$0xf0] }
  0x4f   :  { %789 = vmatpush.bf16.msra.mxu0 %v1311_v21  ;;  %v1396_v21 = vld [vmem:[#allocation2 + $0x228] sm:$0xf0] }
  0x50   :  { %783 = vmatpush.bf16.msra.mxu2 %v1191_v31  ;;  %771 = vmatmul.bf16.vlgmr.msrb.gmra.mxu3 %v1886_v56  ;;  %v1479_v56 = vor.u32 %v1698_v5, %v1476_v6  ;;  %v1399_v29 = vor.u32 %v1678_v20, %v1396_v21  ;;  %v1644_v31 = vld [vmem:[#allocation2 + $0x114] sm:$0xf]  ;;  %v1709_v6 = vld [vmem:[#allocation5 + $0x8] sm:$0xff] }
  0x51   :  { %815 = vmatpush.bf16.msra.mxu3 %v1439_v22  ;;  %745 = vmatmul.bf16.vlgmr.msrb.gmra.mxu1 %v1911_v37  ;;  %v1343_v22 = vor.u32 %v1664_v12, %v1340_v14  ;;  %v1263_v39 = vor.u32 %v1644_v31, %v1260_v32  ;;  %v1712_v5 = vld [vmem:[#allocation5 + $0x20] sm:$0xff] }
  0x52   :  { %802 = vmatpush.bf16.msra.mxu1 %v1375_v34  ;;  %v1388_v34 = vld [vmem:[#allocation2 + $0x218] sm:$0xf0] }
  0x53   :  { %790 = vmatpush.bf16.msra.mxu0 %v1303_v38  ;;  %784 = vmatmul.bf16.vlgmr.msra.gmra.mxu2 %v1890_v1  ;;  %v1276_v1 = vld [vmem:[#allocation2 + $0x138] sm:$0xf0]  ;;  %v1660_v38 = vld [vmem:[#allocation2 + $0x194] sm:$0xf]  ;;  %v1391_v44 = vor.u32 %v1676_v33, %v1388_v34 }
  0x54   :  { %828 = vmatpush.bf16.msrb.mxu2 %v1503_v35  ;;  %v1279_v13 = vor.u32 %v1648_v8, %v1276_v1  ;;  %v1335_v35 = vor.u32 %v1662_v24, %v1332_v26  ;;  %v1721_v26 = vld [vmem:[#allocation5 + $0x68] sm:$0xff] }
  0x55   :  { %816 = vmatpush.bf16.msra.mxu3 %v1431_v42  ;;  %v1452_v42 = vld [vmem:[#allocation2 + $0x298] sm:$0xf0] }
  0x56   :  { %803 = vmatpush.bf16.msra.mxu1 %v1367_v48  ;;  %v1380_v48 = vld [vmem:[#allocation2 + $0x208] sm:$0xf0]  ;;  %v1455_v50 = vor.u32 %v1692_v41, %v1452_v42  ;;  %v1716_v41 = vld [vmem:[#allocation5 + $0x40] sm:$0xff] }
  0x57   :  { %791 = vmatpush.bf16.msra.mxu0 %v1295_v52  ;;  %v1255_v52 = vor.u32 %v1642_v45, %v1252_v46  ;;  %v1383_v55 = vor.u32 %v1674_v47, %v1380_v48 }
  0x58   :  { %829 = vmatpush.bf16.msrb.mxu2 %v1495_v49  ;;  %v1327_v49 = vor.u32 %v1660_v38, %v1324_v40  ;;  %v1717_v40 = vld [vmem:[#allocation5 + $0x48] sm:$0xff] }
  0x59   :  { %817 = vmatpush.bf16.msra.mxu3 %v1423_v57  ;;  %v1690_v57 = vld [vmem:[#allocation2 + $0x284] sm:$0xf] }
  0x5a   :  { %804 = vmatpush.bf16.msra.mxu1 %v1359_v62  ;;  %v1447_v62 = vor.u32 %v1690_v57, %v1444_v58 }
  0x5b   :  { %792 = vmatpush.bf16.msra.mxu0 %v1287_v3  ;;  %v1714_v3 = vld [vmem:[#allocation5 + $0x30] sm:$0xff] }
  0x5c   :  { %830 = vmatpush.bf16.msrb.mxu2 %v1487_v63  ;;  %v1511_v63 = vor.u32 %v1706_v59, %v1508_v60 }
  0x5d   :  { %818 = vmatpush.bf16.msra.mxu3 %v1415_v7 }
  0x5e   :  { %805 = vmatpush.bf16.msra.mxu1 %v1351_v11 }
  0x5f   :  { %793 = vmatpush.bf16.msra.mxu0 %v1279_v13 }
  0x60   :  { %831 = vmatpush.bf16.msrb.mxu2 %v1479_v56 }
  0x61   :  { %819 = vmatpush.bf16.msra.mxu3 %v1407_v17  ;;  %v1723_v17 = vld [vmem:[#allocation5 + $0x78] sm:$0xff] }
  0x62   :  { %806 = vmatpush.bf16.msra.mxu1 %v1343_v22  ;;  %v1722_v22 = vld [vmem:[#allocation5 + $0x70] sm:$0xff] }
  0x63   :  { %794 = vmatpush.bf16.msra.mxu0 %v1271_v25 }
  0x64   :  { %832 = vmatpush.bf16.msrb.mxu2 %v1471_v23 }
  0x65   :  { %820 = vmatpush.bf16.msra.mxu3 %v1399_v29  ;;  %v1720_v29 = vld [vmem:[#allocation5 + $0x60] sm:$0xff] }
  0x66   :  { %807 = vmatpush.bf16.msra.mxu1 %v1335_v35  ;;  %v1719_v35 = vld [vmem:[#allocation5 + $0x58] sm:$0xff] }
  0x67   :  { %795 = vmatpush.bf16.msra.mxu0 %v1263_v39 }
  0x68   :  { %833 = vmatpush.bf16.msrb.mxu2 %v1463_v36  ;;  %v1718_v36 = vld [vmem:[#allocation5 + $0x50] sm:$0xff] }
  0x69   :  { %821 = vmatpush.bf16.msra.mxu3 %v1391_v44 }
  0x6a   :  { %808 = vmatpush.bf16.msra.mxu1 %v1327_v49 }
  0x6b   :  { %796 = vmatpush.bf16.msra.mxu0 %v1255_v52 }
  0x6c   :  { %834 = vmatpush.bf16.msrb.mxu2 %v1455_v50 }
  0x6d   :  { %822 = vmatpush.bf16.msra.mxu3 %v1383_v55 }
  0x6e   :  { %809 = vmatpush.bf16.msra.mxu1 %v1319_v61  ;;  %797 = vmatmul.bf16.vlgmr.msra.gmra.mxu0 %v1878_v51  ;;  %v1711_v51 = vld [vmem:[#allocation5 + $0x18] sm:$0xff] }
  0x70   :  { %823 = vmatmul.bf16.vlgmr.msra.gmra.mxu3 %v1909_v30  ;;  %835 = vmatpush.bf16.msrb.mxu2 %v1447_v62  ;;  %v1710_v30 = vld [vmem:[#allocation5 + $0x10] sm:$0xff] }
  0x71   :  { %810 = vmatmul.bf16.vlgmr.msra.gmra.mxu1 %v1888_v0  ;;  %1003 = vmatpush.bf16.msrb.mxu3 %v1723_v17 }
  0x72   :  { %990 = vmatpush.bf16.msrb.mxu1 %v1715_v2 }
  0x73   :  { %836 = vmatmul.bf16.vlgmr.msrb.gmra.mxu2 %v1911_v37  ;;  %v1708_v37 = vld [vmem:[#allocation5] sm:$0xff] }
  0x74   :  { %848 = vmatpush.bf16.msra.mxu2 %v1511_v63 }
  0x75   :  { %1004 = vmatpush.bf16.msrb.mxu3 %v1722_v22 }
  0x76   :  { %991 = vmatpush.bf16.msrb.mxu1 %v1714_v3  ;;  %v1731_v3 = vld [vmem:[%s1964_s5 + $0x38] sm:$0xff] }
  0x77   :  { %1086 = vmatpush.bf16.msrb.mxu0 %v1731_v3 }
  0x79   :  { %1005 = vmatpush.bf16.msrb.mxu3 %v1721_v26 }
  0x7a   :  { %992 = vmatpush.bf16.msrb.mxu1 %v1713_v4  ;;  %v1730_v4 = vld [vmem:[%s1964_s5 + $0x30] sm:$0xff] }
  0x7b   :  { %1087 = vmatpush.bf16.msrb.mxu0 %v1730_v4 }
  0x7d   :  { %1006 = vmatpush.bf16.msrb.mxu3 %v1720_v29 }
  0x7e   :  { %993 = vmatpush.bf16.msrb.mxu1 %v1712_v5  ;;  %v1729_v5 = vld [vmem:[%s1964_s5 + $0x28] sm:$0xff] }
  0x7f   :  { %1088 = vmatpush.bf16.msrb.mxu0 %v1729_v5 }
  0x81   :  { %1007 = vmatpush.bf16.msrb.mxu3 %v1719_v35 }
  0x82   :  { %994 = vmatpush.bf16.msrb.mxu1 %v1711_v51  ;;  %v1728_v51 = vld [vmem:[%s1964_s5 + $0x20] sm:$0xff] }
  0x83   :  { %1513 = vmatmul.msk.bf16.vlgmr.msra.gmra.mxu2 %vm668_vm0, %v1899_v43  ;;  %v172_v43 = vld [vmem:[%s1961_s2] sm:$0x3]  ;;  %1089 = vmatpush.bf16.msrb.mxu0 %v1728_v51 }
  0x84   :  { %v174_v11 = vperm.slane %v172_v43, 0  ;;  %v175_v45 = vperm.slane %v172_v43, 1  ;;  %v1739_v43 = vld [vmem:[%s1963_s4] ss:$0 sm:$0xff] }
  0x85   :  { %1008 = vmatpush.bf16.msrb.mxu3 %v1718_v36 }
  0x86   :  { %995 = vmatpush.bf16.msrb.mxu1 %v1710_v30  ;;  %v1727_v30 = vld [vmem:[%s1964_s5 + $0x18] sm:$0xff] }
  0x87   :  { %1090 = vmatpush.bf16.msrb.mxu0 %v1727_v30 }
  0x89   :  { %1009 = vmatpush.bf16.msrb.mxu3 %v1717_v40 }
  0x8a   :  { %996 = vmatpush.bf16.msrb.mxu1 %v1709_v6  ;;  %v1726_v6 = vld [vmem:[%s1964_s5 + $0x10] sm:$0xff] }
  0x8b   :  { %1091 = vmatpush.bf16.msrb.mxu0 %v1726_v6 }
  0x8d   :  { %1010 = vmatpush.bf16.msrb.mxu3 %v1716_v41 }
  0x8e   :  { %997 = vmatpush.bf16.msrb.mxu1 %v1708_v37  ;;  %v1725_v37 = vld [vmem:[%s1964_s5 + $0x8] sm:$0xff] }
  0x8f   :  { %1092 = vmatpush.bf16.msrb.mxu0 %v1725_v37 }
  0xab   :  { %v681_v7 = vpop.f32.mrf.mxu0 }
  0xac   :  { %v682_v12 = vadd.f32 %v681_v7, %v174_v11 }
  0xae   :  { %v694_v0 = vpop.f32.mrf.mxu1 }
  0xaf   :  { %v695_v14 = vadd.f32 %v694_v0, %v682_v12 }
  0xb2   :  { %v707_v8 = vpop.f32.mrf.mxu2 }
  0xb3   :  { %v720_v1 = vpop.f32.mrf.mxu3  ;;  %v683_v9 = vpop.f32.mrf.mxu0  ;;  %v708_v16 = vadd.f32 %v707_v8, %v695_v14  ;;  %v1724_v8 = vld [vmem:[%s1964_s5] sm:$0xff] }
  0xb4   :  { %1093 = vmatpush.bf16.msrb.mxu0 %v1724_v8 }
  0xb5   :  { %v721_v18 = vadd.f32 %v720_v1, %v708_v16 }
  0xb6   :  { %v696_v10 = vpop.f32.mrf.mxu1 }
  0xba   :  { %v709_v56 = vpop.f32.mrf.mxu2 }
  0xbb   :  { %v722_v13 = vpop.f32.mrf.mxu3 }
  0xbc   :  { %v1740_v13 = vld [vmem:[%s1965_s6] ss:$0 sm:$0xff] }
  0xc2   :  { %v759_v15 = vpop.f32.mrf.mxu2 }
  0xca   :  { %v761_v21 = vpop.f32.mrf.mxu2 }
  0xcb   :  { %v733_v19 = vpop.f32.mrf.mxu0 }
  0xcc   :  { %v734_v20 = vadd.f32 %v733_v19, %v721_v18 }
  0xce   :  { %v746_v23 = vpop.f32.mrf.mxu1 }
  0xcf   :  { %v747_v24 = vadd.f32 %v746_v23, %v734_v20 }
  0xd1   :  { %v760_v25 = vadd.f32 %v759_v15, %v747_v24 }
  0xd3   :  { %v854_v27 = vmax.f32 %v760_v25, 0.0  ;;  %v735_v28 = vpop.f32.mrf.mxu0  ;;  %v772_v33 = vpop.f32.mrf.mxu3 }
  0xd4   :  { %v773_v48 = vadd.f32 %v772_v33, %v175_v45 }
  0xd5   :  { %v856_v31 = vpack.c.bf16 %v854_v27, %v854_v27 }
  0xd6   :  { %v785_v32 = vpop.f32.mrf.mxu2  ;;  %v748_v34 = vpop.f32.mrf.mxu1 }
  0xd7   :  { %998 = vmatmul.bf16.vlgmr.msrb.gmra.mxu1 %v856_v31  ;;  %v786_v52 = vadd.f32 %v785_v32, %v773_v48 }
  0xdb   :  { %v774_v39 = vpop.f32.mrf.mxu3 }
  0xde   :  { %v787_v38 = vpop.f32.mrf.mxu2 }
  0xeb   :  { %v798_v42 = vpop.f32.mrf.mxu0 }
  0xec   :  { %v799_v53 = vadd.f32 %v798_v42, %v786_v52 }
  0xee   :  { %v811_v44 = vpop.f32.mrf.mxu1 }
  0xef   :  { %v812_v57 = vadd.f32 %v811_v44, %v799_v53 }
  0xf3   :  { %v824_v46 = vpop.f32.mrf.mxu3  ;;  %v800_v47 = vpop.f32.mrf.mxu0 }
  0xf4   :  { %v825_v58 = vadd.f32 %v824_v46, %v812_v57 }
  0xf6   :  { %v837_v49 = vpop.f32.mrf.mxu2  ;;  %v813_v50 = vpop.f32.mrf.mxu1 }
  0xf7   :  { %v838_v59 = vadd.f32 %v837_v49, %v825_v58 }
  0xfb   :  { %v826_v54 = vpop.f32.mrf.mxu3 }
  0xfe   :  { %v839_v55 = vpop.f32.mrf.mxu2 }
 0x106   :  { %v850_v60 = vpop.f32.mrf.mxu2 }
 0x107   :  { %v851_v61 = vadd.f32 %v850_v60, %v838_v59 }
 0x109   :  { %v855_v62 = vmax.f32 %v851_v61, 0.0 }
 0x10b   :  { %v857_v63 = vpack.c.bf16 %v855_v62, %v855_v62 }
 0x10d   :  { %1011 = vmatmul.bf16.vlgmr.msrb.gmra.mxu3 %v857_v63 }
 0x10e   :  { %v852_v2 = vpop.f32.mrf.mxu2 }
 0x154   :  { %v999_v7 = vpop.f32.mrf.mxu1 }
 0x155   :  { %v1000_v1 = vadd.f32 %v1739_v43, %v999_v7 }
 0x15c   :  { %v1001_v0 = vpop.f32.mrf.mxu1 }
 0x190   :  { %v1012_v9 = vpop.f32.mrf.mxu3 }
 0x191   :  { %v1013_v10 = vadd.f32 %v1012_v9, %v1000_v1 }
 0x193   :  { %v1016_v11 = vmax.f32 %v1013_v10, 0.0 }
 0x195   :  { %v1017_v56 = vpack.c.bf16 %v1016_v11, %v1016_v11 }
 0x197   :  { %1094 = vmatmul.bf16.vlgmr.msrb.gmra.mxu0 %v1017_v56 }
 0x198   :  { %v1014_v12 = vpop.f32.mrf.mxu3 }
 0x214   :  { %v1095_v14 = vpop.f32.mrf.mxu0 }
 0x215   :  { %v1096_v15 = vadd.f32 %v1740_v13, %v1095_v14 }
 0x217   :  { %v1099_v16 = vmax.f32 %v1096_v15, 0.0 }
 0x219   :  { %1101 = vst.msk [vmem:[#allocation7] sm:$0xff] %vm1100_vm1, %v1099_v16 }
 0x21a   :  { %1112 = dma.vmem_to_hbm [thread:$0]  %s1108_s23, 128, %s1110_s25, [#allocation4]  }
 0x21c   :  { %v1097_v17 = vpop.f32.mrf.mxu0 }
 0x21d   :  { %1817 = dma.done.wait [#allocation4], 128  }
 0x21e   :  { %1818 = vsyncadd [#allocation4], 4294967168 }
 0x21f   :  { %1117 = vsyncpa [#allocation3], 1 }
 0x220   :  { %1118 = vsyncpa [#allocation6], 1 }
 0x221   :  { %1119 = vsyncpa [#allocation4], 1 }

</bundles_post_ra>
